<compile_context>
chip_gen: v5e
topology: v5e:2x2
jax: 0.10.0
libtpu: 0.0.40
codegen_flags: <defaults>
</compile_context>

<pallas_src>
import functools

import numpy as np
import jax
import jax.numpy as jnp
from jax import lax
from jax.experimental import pallas as pl
from jax.experimental.pallas import tpu as pltpu


def _focal_kernel(x_ref, t_ref, o_ref, *, gamma, num_classes, alpha,
                  l_valid, lanes_per_tile, need_mask):
    """One (batch item, pixel tile) block.

    x_ref: (1, C, TR, 128) logits (input dtype; cast per class slice)
    t_ref: (1, TR, 128)   integer class indices
    o_ref: (1, 1, 1, 128) lane-dense partial loss sum for this tile
    """
    j = pl.program_id(1)
    c = num_classes

    # ---- pass 1: per-pixel max over the class axis (unrolled; no (C,TR,128) temps)
    m = x_ref[0, 0].astype(jnp.float32)
    for k in range(1, c):
        m = jnp.maximum(m, x_ref[0, k].astype(jnp.float32))

    # ---- pass 2: softmax denominator + gather of target logit / alpha via selects
    tgt = t_ref[0]                                        # (TR, 128) int
    se = None
    zt = None
    at = None
    for k in range(c):
        zk = x_ref[0, k].astype(jnp.float32) - m          # (TR, 128)
        ek = jnp.exp(zk)
        se = ek if k == 0 else se + ek
        sel = tgt == k
        zt = jnp.where(sel, zk, 0.0 if k == 0 else zt)
        if alpha is not None:
            at = jnp.where(sel, jnp.float32(alpha[k]), 0.0 if k == 0 else at)

    logpt = zt - jnp.log(se)                              # log p_target
    pt = jnp.exp(logpt)

    # (1 - pt) ** gamma with an integer fast path (pure VPU multiplies).
    f = 1.0 - pt
    g = float(gamma)
    if g == 0.0:
        focal = jnp.ones_like(f)
    elif g == round(g) and 1 <= int(round(g)) <= 8:
        focal = f
        for _ in range(int(round(g)) - 1):
            focal = focal * f
    else:
        focal = f ** jnp.float32(g)

    weighted = logpt * at if alpha is not None else logpt
    loss = -focal * weighted                              # (TR, 128)

    if need_mask:
        last = pl.num_programs(1) - 1

        @pl.when(j != last)
        def _():
            o_ref[...] = jnp.sum(loss, axis=0).reshape(1, 1, 1, 128)

        @pl.when(j == last)  # only the last pixel tile pays for the mask
        def _():
            tr, ln = loss.shape
            row = lax.broadcasted_iota(jnp.int32, (tr, ln), 0)
            lane = lax.broadcasted_iota(jnp.int32, (tr, ln), 1)
            pix = j * lanes_per_tile + row * ln + lane
            lm = jnp.where(pix < l_valid, loss, 0.0)
            o_ref[...] = jnp.sum(lm, axis=0).reshape(1, 1, 1, 128)
    else:
        o_ref[...] = jnp.sum(loss, axis=0).reshape(1, 1, 1, 128)


def focal_loss(logits_nchw, target_nhw, *, gamma=2, alpha=None,
               size_average=True, block_bytes=None):
    """Focal loss matching the PyTorch FocalLoss.forward.

    logits_nchw: (N, C, H, W) float (f32 or bf16)
    target_nhw:  (N, H, W) integer class indices in [0, C)
    alpha: None, python float/int (binary only), or per-class list/array.
    """
    n, c, h, w = logits_nchw.shape
    l = h * w

    # ---- alpha handling (mirrors the PyTorch __init__; alpha is static) ----
    if alpha is None:
        alpha_tup = None
    elif isinstance(alpha, (float, int)) and not isinstance(alpha, bool):
        # TODO(synk): scalar alpha in the original implies binary classification;
        # we require C == 2 instead of silently mis-weighting classes >= 2.
        if c != 2:
            raise ValueError(f"scalar alpha requires C == 2, got C = {c}")
        alpha_tup = (float(alpha), float(1.0 - alpha))
    else:
        av = np.asarray(alpha, np.float32).reshape(-1)
        if av.shape[0] != c:
            raise ValueError(f"alpha must have {c} entries, got {av.shape[0]}")
        alpha_tup = tuple(float(v) for v in av)

    # ---- generation-aware, dtype-aware tile sizing ----
    itemsize = jnp.dtype(logits_nchw.dtype).itemsize
    try:
        vmem_cap = int(pltpu.get_tpu_info().vmem_capacity_bytes)
    except Exception:
        vmem_cap = 64 << 20                      # safe fallback for every generation
    if block_bytes is None:
        block_bytes = (2 << 20) if vmem_cap <= (64 << 20) else (4 << 20)

    l128 = -(-l // 128) * 128                    # pad only to the next multiple of 128
    r = l128 // 128
    tr_budget = max(8, (block_bytes // (c * 128 * itemsize)) // 8 * 8)
    tr = r if r <= tr_budget else tr_budget
    grid_l = -(-r // tr)                         # ragged last block handled in-kernel
    need_mask = (grid_l * tr * 128 != l)

    # ---- free reshapes (NO transpose); tiny pad only if H*W % 128 != 0 ----
    x = logits_nchw.reshape(n, c, l)
    t = target_nhw.reshape(n, l)
    if not jnp.issubdtype(t.dtype, jnp.integer):
        t = t.astype(jnp.int32)
    if l128 != l:
        # TODO(synk): jnp.pad still materializes a copy; only taken when
        # H*W % 128 != 0 and it pads at most 127 pixels (not a full tile).
        x = jnp.pad(x, ((0, 0), (0, 0), (0, l128 - l)))
        t = jnp.pad(t, ((0, 0), (0, l128 - l)))
    x = x.reshape(n, c, r, 128)
    t = t.reshape(n, r, 128)
    t_itemsize = jnp.dtype(t.dtype).itemsize

    kernel = functools.partial(
        _focal_kernel, gamma=float(gamma), num_classes=c, alpha=alpha_tup,
        l_valid=l, lanes_per_tile=tr * 128, need_mask=need_mask)

    # ---- VMEM budget: double-buffered input blocks + O(TR*128) f32 temps ----
    lb = c * tr * 128 * itemsize                 # logits block
    tb = tr * 128 * t_itemsize                   # target block
    temps = 8 * tr * 128 * 4                     # m, se, zt, at, pt, loss, ...
    vmem_limit = 2 * (lb + tb) + temps + (2 << 20)
    vmem_limit = int(min(max(vmem_limit, 16 << 20), vmem_cap - (8 << 20)))

    cost = pl.CostEstimate(
        flops=int(n * l * (6 * c + 12)),
        transcendentals=int(n * l * (c + 2)),
        bytes_accessed=int(x.size * itemsize + t.size * t_itemsize
                           + n * grid_l * 128 * 4))

    partials = pl.pallas_call(
        kernel,
        out_shape=jax.ShapeDtypeStruct((n, grid_l, 1, 128), jnp.float32),
        grid_spec=pltpu.PrefetchScalarGridSpec(
            num_scalar_prefetch=0,
            grid=(n, grid_l),
            in_specs=[
                pl.BlockSpec((1, c, tr, 128), lambda i, j: (i, 0, j, 0)),  # logits
                pl.BlockSpec((1, tr, 128), lambda i, j: (i, j, 0)),        # targets
            ],
            out_specs=pl.BlockSpec((1, 1, 1, 128), lambda i, j: (i, j, 0, 0)),
        ),
        compiler_params=pltpu.CompilerParams(
            dimension_semantics=("parallel", "parallel"),
            vmem_limit_bytes=vmem_limit),
        cost_estimate=cost,
    )(x, t)

    total = jnp.sum(partials)
    if size_average:
        return total / jnp.float32(n * l)
    return total


def _focal_loss_ref(logits_nchw, target_nhw, gamma, alpha_vec, size_average):
    n, c, h, w = logits_nchw.shape
    x = jnp.transpose(logits_nchw, (0, 2, 3, 1)).reshape(-1, c).astype(jnp.float32)
    t = target_nhw.reshape(-1).astype(jnp.int32)
    logp = jax.nn.log_softmax(x, axis=1)
    logpt = jnp.take_along_axis(logp, t[:, None], axis=1)[:, 0]
    pt = jnp.exp(logpt)
    if alpha_vec is not None:
        logpt = logpt * alpha_vec[t]
    loss = -1.0 * (1.0 - pt) ** gamma * logpt
    return loss.mean() if size_average else loss.sum()


if __name__ == "__main__":
    key = jax.random.PRNGKey(0)
    k1, k2, k3, k4, k5, k6 = jax.random.split(key, 6)

    # Case 1: module defaults + per-class alpha list, mean reduction.
    N, C, H, W = 2, 4, 16, 16
    logits = jax.random.normal(k1, (N, C, H, W), jnp.float32)
    target = jax.random.randint(k2, (N, H, W), 0, C, jnp.int32)
    alpha = [0.1, 0.2, 0.3, 0.4]
    out = focal_loss(logits, target, gamma=2, alpha=alpha, size_average=True)
    out = jax.block_until_ready(out)
    ref = _focal_loss_ref(logits, target, 2.0,
                          jnp.asarray(alpha, jnp.float32), True)
    assert jnp.allclose(out, ref, rtol=1e-4, atol=1e-5), (out, ref)

    # Case 2: odd spatial size (pad + mask path), alpha=None, sum reduction.
    N2, C2, H2, W2 = 1, 3, 7, 7
    logits2 = jax.random.normal(k3, (N2, C2, H2, W2), jnp.float32)
    target2 = jax.random.randint(k4, (N2, H2, W2), 0, C2, jnp.int32)
    out2 = focal_loss(logits2, target2, gamma=2, alpha=None, size_average=False)
    out2 = jax.block_until_ready(out2)
    ref2 = _focal_loss_ref(logits2, target2, 2.0, None, False)
    assert jnp.allclose(out2, ref2, rtol=1e-4, atol=1e-5), (out2, ref2)

    # Case 3: multi-tile grid with a ragged last block (tiny forced tile size),
    # exercising the pl.when-gated mask and per-tile partial sums.
    N3, C3, H3, W3 = 1, 3, 40, 40
    logits3 = jax.random.normal(k5, (N3, C3, H3, W3), jnp.float32)
    target3 = jax.random.randint(k6, (N3, H3, W3), 0, C3, jnp.int32)
    alpha3 = [0.2, 0.3, 0.5]
    out3 = focal_loss(logits3, target3, gamma=2, alpha=alpha3,
                      size_average=True, block_bytes=16 * 1024)
    out3 = jax.block_until_ready(out3)
    ref3 = _focal_loss_ref(logits3, target3, 2.0,
                           jnp.asarray(alpha3, jnp.float32), True)
    assert jnp.allclose(out3, ref3, rtol=1e-4, atol=1e-5), (out3, ref3)

    print("KERNEL_OK")
</pallas_src>

<mosaic_0001>
module attributes {stable_mosaic.version = 11 : i64} {
  func.func @_focal_kernel(%arg0: i32, %arg1: i32, %arg2: memref<1x4x2x128xf32, #tpu.memory_space<vmem>>, %arg3: memref<1x2x128xi32, #tpu.memory_space<vmem>>, %arg4: memref<1x1x1x128xf32, #tpu.memory_space<vmem>>) attributes {dimension_semantics = [#tpu.dimension_semantics<parallel>, #tpu.dimension_semantics<parallel>], iteration_bounds = array<i64: 2, 1>, scalar_prefetch = 0 : i64, scratch_operands = 0 : i64, tpu.core_type = #tpu.core_type<tc>, window_params = [{transform_indices = @transform_0, window_bounds = array<i64: 1, 4, 2, 128>}, {transform_indices = @transform_1, window_bounds = array<i64: 1, 2, 128>}, {transform_indices = @transform_2, window_bounds = array<i64: 1, 1, 1, 128>}]} {
    %c0 = arith.constant 0 : index
    %c0_0 = arith.constant 0 : index
    %c0_1 = arith.constant 0 : index
    %c0_2 = arith.constant 0 : index
    %0 = vector.load %arg2[%c0, %c0_0, %c0_1, %c0_2] : memref<1x4x2x128xf32, #tpu.memory_space<vmem>>, vector<1x1x2x128xf32>
    %1 = vector.shape_cast %0 : vector<1x1x2x128xf32> to vector<2x128xf32>
    %c0_3 = arith.constant 0 : index
    %c1 = arith.constant 1 : index
    %c0_4 = arith.constant 0 : index
    %c0_5 = arith.constant 0 : index
    %2 = vector.load %arg2[%c0_3, %c1, %c0_4, %c0_5] : memref<1x4x2x128xf32, #tpu.memory_space<vmem>>, vector<1x1x2x128xf32>
    %3 = vector.shape_cast %2 : vector<1x1x2x128xf32> to vector<2x128xf32>
    %4 = arith.maximumf %1, %3 : vector<2x128xf32>
    %c0_6 = arith.constant 0 : index
    %c2 = arith.constant 2 : index
    %c0_7 = arith.constant 0 : index
    %c0_8 = arith.constant 0 : index
    %5 = vector.load %arg2[%c0_6, %c2, %c0_7, %c0_8] : memref<1x4x2x128xf32, #tpu.memory_space<vmem>>, vector<1x1x2x128xf32>
    %6 = vector.shape_cast %5 : vector<1x1x2x128xf32> to vector<2x128xf32>
    %7 = arith.maximumf %4, %6 : vector<2x128xf32>
    %c0_9 = arith.constant 0 : index
    %c3 = arith.constant 3 : index
    %c0_10 = arith.constant 0 : index
    %c0_11 = arith.constant 0 : index
    %8 = vector.load %arg2[%c0_9, %c3, %c0_10, %c0_11] : memref<1x4x2x128xf32, #tpu.memory_space<vmem>>, vector<1x1x2x128xf32>
    %9 = vector.shape_cast %8 : vector<1x1x2x128xf32> to vector<2x128xf32>
    %10 = arith.maximumf %7, %9 : vector<2x128xf32>
    %c0_12 = arith.constant 0 : index
    %c0_13 = arith.constant 0 : index
    %c0_14 = arith.constant 0 : index
    %11 = vector.load %arg3[%c0_12, %c0_13, %c0_14] : memref<1x2x128xi32, #tpu.memory_space<vmem>>, vector<1x2x128xi32>
    %12 = vector.shape_cast %11 : vector<1x2x128xi32> to vector<2x128xi32>
    %c0_15 = arith.constant 0 : index
    %c0_16 = arith.constant 0 : index
    %c0_17 = arith.constant 0 : index
    %c0_18 = arith.constant 0 : index
    %13 = vector.load %arg2[%c0_15, %c0_16, %c0_17, %c0_18] : memref<1x4x2x128xf32, #tpu.memory_space<vmem>>, vector<1x1x2x128xf32>
    %14 = vector.shape_cast %13 : vector<1x1x2x128xf32> to vector<2x128xf32>
    %15 = arith.subf %14, %10 : vector<2x128xf32>
    %16 = math.exp %15 : vector<2x128xf32>
    %c0_i32 = arith.constant 0 : i32
    %17 = vector.broadcast %c0_i32 : i32 to vector<2x128xi32>
    %18 = arith.cmpi eq, %12, %17 : vector<2x128xi32>
    %cst = arith.constant 0.000000e+00 : f32
    %19 = vector.broadcast %cst : f32 to vector<2x128xf32>
    %20 = arith.select %18, %15, %19 : vector<2x128xi1>, vector<2x128xf32>
    %cst_19 = arith.constant 1.000000e-01 : f32
    %cst_20 = arith.constant 0.000000e+00 : f32
    %21 = vector.broadcast %cst_19 : f32 to vector<2x128xf32>
    %22 = vector.broadcast %cst_20 : f32 to vector<2x128xf32>
    %23 = arith.select %18, %21, %22 : vector<2x128xi1>, vector<2x128xf32>
    %c0_21 = arith.constant 0 : index
    %c1_22 = arith.constant 1 : index
    %c0_23 = arith.constant 0 : index
    %c0_24 = arith.constant 0 : index
    %24 = vector.load %arg2[%c0_21, %c1_22, %c0_23, %c0_24] : memref<1x4x2x128xf32, #tpu.memory_space<vmem>>, vector<1x1x2x128xf32>
    %25 = vector.shape_cast %24 : vector<1x1x2x128xf32> to vector<2x128xf32>
    %26 = arith.subf %25, %10 : vector<2x128xf32>
    %27 = math.exp %26 : vector<2x128xf32>
    %28 = arith.addf %16, %27 : vector<2x128xf32>
    %c1_i32 = arith.constant 1 : i32
    %29 = vector.broadcast %c1_i32 : i32 to vector<2x128xi32>
    %30 = arith.cmpi eq, %12, %29 : vector<2x128xi32>
    %31 = arith.select %30, %26, %20 : vector<2x128xi1>, vector<2x128xf32>
    %cst_25 = arith.constant 2.000000e-01 : f32
    %32 = vector.broadcast %cst_25 : f32 to vector<2x128xf32>
    %33 = arith.select %30, %32, %23 : vector<2x128xi1>, vector<2x128xf32>
    %c0_26 = arith.constant 0 : index
    %c2_27 = arith.constant 2 : index
    %c0_28 = arith.constant 0 : index
    %c0_29 = arith.constant 0 : index
    %34 = vector.load %arg2[%c0_26, %c2_27, %c0_28, %c0_29] : memref<1x4x2x128xf32, #tpu.memory_space<vmem>>, vector<1x1x2x128xf32>
    %35 = vector.shape_cast %34 : vector<1x1x2x128xf32> to vector<2x128xf32>
    %36 = arith.subf %35, %10 : vector<2x128xf32>
    %37 = math.exp %36 : vector<2x128xf32>
    %38 = arith.addf %28, %37 : vector<2x128xf32>
    %c2_i32 = arith.constant 2 : i32
    %39 = vector.broadcast %c2_i32 : i32 to vector<2x128xi32>
    %40 = arith.cmpi eq, %12, %39 : vector<2x128xi32>
    %41 = arith.select %40, %36, %31 : vector<2x128xi1>, vector<2x128xf32>
    %cst_30 = arith.constant 3.000000e-01 : f32
    %42 = vector.broadcast %cst_30 : f32 to vector<2x128xf32>
    %43 = arith.select %40, %42, %33 : vector<2x128xi1>, vector<2x128xf32>
    %c0_31 = arith.constant 0 : index
    %c3_32 = arith.constant 3 : index
    %c0_33 = arith.constant 0 : index
    %c0_34 = arith.constant 0 : index
    %44 = vector.load %arg2[%c0_31, %c3_32, %c0_33, %c0_34] : memref<1x4x2x128xf32, #tpu.memory_space<vmem>>, vector<1x1x2x128xf32>
    %45 = vector.shape_cast %44 : vector<1x1x2x128xf32> to vector<2x128xf32>
    %46 = arith.subf %45, %10 : vector<2x128xf32>
    %47 = math.exp %46 : vector<2x128xf32>
    %48 = arith.addf %38, %47 : vector<2x128xf32>
    %c3_i32 = arith.constant 3 : i32
    %49 = vector.broadcast %c3_i32 : i32 to vector<2x128xi32>
    %50 = arith.cmpi eq, %12, %49 : vector<2x128xi32>
    %51 = arith.select %50, %46, %41 : vector<2x128xi1>, vector<2x128xf32>
    %cst_35 = arith.constant 4.000000e-01 : f32
    %52 = vector.broadcast %cst_35 : f32 to vector<2x128xf32>
    %53 = arith.select %50, %52, %43 : vector<2x128xi1>, vector<2x128xf32>
    %54 = math.log %48 : vector<2x128xf32>
    %55 = arith.subf %51, %54 : vector<2x128xf32>
    %56 = math.exp %55 : vector<2x128xf32>
    %cst_36 = arith.constant 1.000000e+00 : f32
    %57 = vector.broadcast %cst_36 : f32 to vector<2x128xf32>
    %58 = arith.subf %57, %56 : vector<2x128xf32>
    %59 = arith.mulf %58, %58 : vector<2x128xf32>
    %60 = arith.mulf %55, %53 : vector<2x128xf32>
    %cst_37 = arith.constant 0.000000e+00 : f32
    %61 = vector.broadcast %cst_37 : f32 to vector<2x128xf32>
    %62 = arith.subf %61, %59 : vector<2x128xf32>
    %63 = arith.mulf %62, %60 : vector<2x128xf32>
    %cst_38 = arith.constant dense<0.000000e+00> : vector<128xf32>
    %64 = vector.multi_reduction <add>, %63, %cst_38 [0] : vector<2x128xf32> to vector<128xf32>
    %65 = vector.shape_cast %64 : vector<128xf32> to vector<1x1x1x128xf32>
    %c0_39 = arith.constant 0 : index
    %c0_40 = arith.constant 0 : index
    %c0_41 = arith.constant 0 : index
    %c0_42 = arith.constant 0 : index
    %66 = vector.load %arg4[%c0_39, %c0_40, %c0_41, %c0_42] : memref<1x1x1x128xf32, #tpu.memory_space<vmem>>, vector<1x1x1x128xf32>
    tpu.vector_store %arg4[%c0_39, %c0_40, %c0_41, %c0_42], %65 {strides = array<i32>} : memref<1x1x1x128xf32, #tpu.memory_space<vmem>>, vector<1x1x1x128xf32>,
    return
  }
  func.func @transform_0(%arg0: i32, %arg1: i32) -> (i32, i32, i32, i32) {
    %c0_i32 = arith.constant 0 : i32
    %c0_i32_0 = arith.constant 0 : i32
    %c0_i32_1 = arith.constant 0 : i32
    return %arg0, %c0_i32, %arg1, %c0_i32_0 : i32, i32, i32, i32
  }
  func.func @transform_1(%arg0: i32, %arg1: i32) -> (i32, i32, i32) {
    %c0_i32 = arith.constant 0 : i32
    %c0_i32_0 = arith.constant 0 : i32
    return %arg0, %arg1, %c0_i32 : i32, i32, i32
  }
  func.func @transform_2(%arg0: i32, %arg1: i32) -> (i32, i32, i32, i32) {
    %c0_i32 = arith.constant 0 : i32
    %c0_i32_0 = arith.constant 0 : i32
    %c0_i32_1 = arith.constant 0 : i32
    return %arg0, %arg1, %c0_i32, %c0_i32_0 : i32, i32, i32, i32
  }
}

</mosaic_0001>

<bundles_post_ra>
// kernel: tpu_custom_call.1
= control target key start
LH: loop header
LB: loop body
LE: loop exit
PB: predicated region body
PF: predicated region fallthrough
CT: control target
= control target key end

     0   :  { %7 = vsyncpa [#allocation3], 0  ;;  %s801_s0 = inlined_call_operand.hbm [shape: f32[2,4,2,128], index: 0, kind: input, shape index: {}]   ;;  %s802_s1 = inlined_call_operand.hbm [shape: s32[2,2,128], index: 1, kind: input, shape index: {}]   ;;  %s803_s2 = inlined_call_operand.hbm [shape: f32[2,1,1,128], index: 2, kind: output, shape index: {}]  }
   0x1   :  { %9 = vsyncpa [#allocation3 + $0x1], 0 }
   0x2   :  { %10 = vsyncpa [#allocation6], 0 }
   0x3   :  { %12 = vsyncpa [#allocation6 + $0x1], 0 }
   0x4   :  { %13 = vsyncpa [#allocation4], 0 }
   0x5   :  { %15 = vsyncpa [#allocation4 + $0x1], 0  ;;  %s660_s9 = smov 0   ;;  %s662_s10 = smov 0  }
   0x6   :  { %s664_s11 = smov 0   ;;  %s666_s12 = smov 0  }
   0x7   :  { %s668_s13 = smov 0   ;;  %s670_s14 = smov 0  }
   0x8 LB: > { %s394_s15 = sadd.s32 4294967295, %s640_s14   ;;  %s395_s16 = sadd.s32 4294967294, %s640_s14   ;;  %s640_s14 = sphi %s670_s14, %s21_s14   ;;  %s636_s13 = sphi %s668_s13, %s813_s13   ;;  %s632_s12 = sphi %s666_s12, %s812_s12   ;;  %s628_s11 = sphi %s664_s11, %s811_s11   ;;  %s624_s10 = sphi %s662_s10, %s810_s10   ;;  %s620_s9 = sphi %s660_s9, %s809_s9  }
   0x9   : > { %s33_s17 = sadd.s32 1, %s636_s13  ;;  %s42_s18 = sadd.s32 1, %s628_s11 }
   0xa   : > { %p35_p0 = scmp.ge.s32.totalorder %s33_s17, 2  ;;  %p49_p1 = scmp.ne.s32.totalorder %s628_s11, %s624_s10 }
   0xb   : > { %p50_p2 = scmp.eq.s32.totalorder %s640_s14, 0  ;;  %p55_p3 = scmp.ne.s32.totalorder %s624_s10, %s620_s9 }
   0xc   : > { %s815_s17 = smov (%p35_p0, %s33_s17), 0  ;;  %p56_p5 = scmp.eq.s32.totalorder %s394_s15, 0 }
   0xd   : > { %p701_p4 = por %p50_p2, %p49_p1  ;;  %s37_s20 = ssub.s32 %s636_s13, %s815_s17 }
   0xe   : > { %p109_p6 = scmp.eq.s32.totalorder %s394_s15, 1  ;;  %p40_p7 = scmp.eq.s32.totalorder %s37_s20, 0 }
   0xf   : > { %p707_p8 = por %p56_p5, %p55_p3  ;;  %p115_p10 = scmp.eq.s32.totalorder %s395_s16, 1 }
  0x10   : > { %p711_p9 = por %p109_p6, %p49_p1  ;;  %p397_p12 = scmp.ge.s32.totalorder %s640_s14, 2 }
  0x11   : > { %s716_s23 = scalar_select %p40_p7, %s628_s11, %s42_s18  }
  0x12   : > { %p718_p11 = por %p115_p10, %p55_p3  ;;  %p429_p13 = scmp.lt.s32.totalorder %s640_s14, 2 }
  0x13   : > { %s135_s25 = sand.u32 1, %s628_s11   ;;  %s411_s27 = sshll.u32 %s636_s13, 3 }
  0x14   : > { %s398_s26 = sshll.u32 %s135_s25, 3  ;;  %s145_s30 = scalar_lea.hbm %s801_s0, %s411_s27 }
  0x15   : > { %s139_s3 = scalar_lea.vmem [#allocation2], %s398_s26  ;;  %s146_s5 = sshll.u32 %s145_s30, 4  ;;  %s147_s5 = int_to_ptr.hbm [resolvable:$true] %s146_s5 }
  0x16   : > { %s148_s4 = sshll.u32 %s139_s3, 4  ;;  %p731_p0 = pnand %p429_p13, %p701_p4  ;;  %s149_s4 = int_to_ptr.vmem [resolvable:$true] %s148_s4 }
  0x17   : > { %p403_p1 = scmp.ge.s32.totalorder %s640_s14, 1  ;;  %s136_s7 = scalar_lea.sflag [#allocation3], %s135_s25 }
  0x18   : > { %s642_s8 = smov 32   ;;  %s643_s15 = smov 2  }
  0x19   : > { %421 = dma.hbm_to_vmem [thread:$0]  (!%p731_p0), %s147_s5, 128, %s149_s4, %s136_s7, %s642_s8, %s642_s8, %s643_s15  }
  0x1a   : > { %p176_p2 = scmp.lt.s32.totalorder %s640_s14, 3  ;;  %s401_s16 = sshll.u32 %s135_s25, 1 }
  0x1b   : > { %s402_s18 = sshll.u32 %s636_s13, 1  ;;  %s162_s27 = scalar_lea.vmem [#allocation5], %s401_s16 }
  0x1c   : > { %p177_p3 = pnand %p403_p1, %p176_p2  ;;  %s167_s19 = scalar_lea.hbm %s802_s1, %s402_s18 }
  0x1d   : > { %s171_s28 = sshll.u32 %s162_s27, 4  ;;  %s169_s29 = sshll.u32 %s167_s19, 4  ;;  %s172_s28 = int_to_ptr.vmem [resolvable:$true] %s171_s28  ;;  %s170_s29 = int_to_ptr.hbm [resolvable:$true] %s169_s29 }
  0x1e   : > { %s159_s30 = scalar_lea.sflag [#allocation6], %s135_s25  ;;  %180 = sbr.rel (%p177_p3) target bundleno = 108 (0x6c), region = 28 }
  0x1f   : > { %424 = dma.hbm_to_vmem [thread:$0]  (!%p731_p0), %s170_s29, 32, %s172_s28, %s159_s30  }
  0x20   : > { %s746_s3 = sand.u32 (!%p177_p3), 1, %s624_s10  }
  0x21   : > { %s404_s4 = sshll.u32 (!%p177_p3), %s746_s3, 3  ;;  %s183_s5 = scalar_lea.sflag (!%p177_p3), [#allocation3], %s746_s3 }
  0x22   : > { %s186_s7 = scalar_lea.vmem (!%p177_p3), [#allocation2], %s404_s4 }
  0x23   : > { %607 = dma.done.wait (%p707_p8), %s183_s5, 128  }
  0x24   : > { %609 = vsyncadd (%p707_p8), %s183_s5, 4294967168  ;;  %s405_s25 = sshll.u32 %s746_s3, 1  ;;  %s193_s6 = scalar_lea.sflag [#allocation6], %s746_s3 }
  0x25   : > { %s196_s8 = scalar_lea.vmem [#allocation5], %s405_s25 }
  0x26   : > { %611 = dma.done.wait (%p707_p8), %s193_s6, 32  }
  0x27   : > { %613 = vsyncadd (%p707_p8), %s193_s6, 4294967264  ;;  %v222_v0 = vld [vmem:[%s186_s7] sm:$0x3]  ;;  %v406_v1 = vld [vmem:[%s186_s7 + $0x2] sm:$0x3]  ;;  %v644_v30 = vmov 0.0   ;;  %s289_s16 = scalar_lea.hbm %s803_s2, %s632_s12 }
  0x28   : > { %v407_v2 = vld [vmem:[%s186_s7 + $0x4] sm:$0x3]  ;;  %v225_v3 = vmax.f32 %v222_v0, %v406_v1  ;;  %v408_v4 = vld [vmem:[%s186_s7 + $0x6] sm:$0x3]  ;;  %v232_v15 = vld [vmem:[%s196_s8] sm:$0x3] }
  0x29   : > { %vm236_vm0 = vcmp.eq.s32.totalorder %v232_v15, 0  ;;  %vm243_vm1 = vcmp.eq.s32.totalorder %v232_v15, 1  ;;  %vm250_vm2 = vcmp.eq.s32.totalorder %v232_v15, 2  ;;  %vm257_vm3 = vcmp.eq.s32.totalorder %v232_v15, 3  ;;  %s221_s18 = scalar_lea.vmem [#allocation7], %s746_s3  ;;  %s293_s26 = sshll.u32 %s289_s16, 4  ;;  %s294_s26 = int_to_ptr.hbm [resolvable:$true] %s293_s26 }
  0x2a   : > { %v228_v5 = vmax.f32 %v225_v3, %v407_v2  ;;  %v238_v31 = vsel %vm236_vm0, 0.1, %v644_v30  ;;  %vm270_vm4 = vcmask 1041408   ;;  %s291_s20 = sshll.u32 %s221_s18, 4  ;;  %s280_s19 = scalar_lea.sflag [#allocation4], %s746_s3  ;;  %s292_s20 = int_to_ptr.vmem [resolvable:$true] %s291_s20 }
  0x2b   : > { %v245_v33 = vsel %vm243_vm1, 0.2, %v238_v31  ;;  %s568_s27 = sshra.s32 %s294_s26, 4  ;;  %s574_s12 = scalar_lea.hbm %s803_s2, 2  ;;  %s569_s27 = int_to_ptr.hbm [resolvable:$true] %s568_s27 }
  0x2c   : > { %v231_v6 = vmax.f32 %v228_v5, %v408_v4  ;;  %v252_v34 = vsel %vm250_vm2, 0.3, %v245_v33  ;;  %s570_s28 = scalar_lea.hbm %s569_s27, 1  ;;  %p575_p7 = scmp.lt.s32.totalorder %s569_s27, %s803_s2 }
  0x2d   : > { %v259_v36 = vsel %vm257_vm3, 0.4, %v252_v34  ;;  %p571_p4 = scmp.ne.s32.totalorder %s569_s27, %s570_s28  ;;  %p576_p8 = scmp.lt.s32.totalorder %s574_s12, %s570_s28 }
  0x2e   : > { %v233_v7 = vsub.f32 %v222_v0, %v231_v6  ;;  %v239_v8 = vsub.f32 %v406_v1, %v231_v6  ;;  %v246_v9 = vsub.f32 %v407_v2, %v231_v6  ;;  %v253_v10 = vsub.f32 %v408_v4, %v231_v6 }
  0x2f   : > { %p572_p5 = pnand %p571_p4, %p711_p9  ;;  %p577_p10 = por %p576_p8, %p575_p7 }
  0x30   : > { %v234_v11 = vmul.f32 1.442695, %v233_v7  ;;  %v240_v12 = vmul.f32 1.442695, %v239_v8  ;;  %v247_v13 = vmul.f32 1.442695, %v246_v9 }
  0x31   : > { %v254_v14 = vmul.f32 1.442695, %v253_v10  ;;  %v237_v22 = vsel %vm236_vm0, %v233_v7, 0.0  ;;  %p573_p6 = pneg %p572_p5 }
  0x32   : > { %482 = vpow2.f32 %v234_v11  ;;  %v244_v24 = vsel %vm243_vm1, %v239_v8, %v237_v22 }
  0x33   : > { %484 = vpow2.f32 %v240_v12  ;;  %v251_v25 = vsel %vm250_vm2, %v246_v9, %v244_v24  ;;  %p578_p13 = pnand %p577_p10, %p573_p6 }
  0x34   : > { %486 = vpow2.f32 %v247_v13  ;;  %v258_v27 = vsel %vm257_vm3, %v253_v10, %v251_v25 }
  0x35   : > { %488 = vpow2.f32 %v254_v14 }
  0x38   : > { %v483_v16 = vpop.eup %482 }
  0x39   : > { %v485_v17 = vpop.eup %484 }
  0x3a   : > { %v487_v18 = vpop.eup %486  ;;  %v242_v19 = vadd.f32 %v485_v17, %v483_v16 }
  0x3b   : > { %v489_v20 = vpop.eup %488 }
  0x3c   : > { %v249_v21 = vadd.f32 %v487_v18, %v242_v19 }
  0x3e   : > { %v256_v23 = vadd.f32 %v489_v20, %v249_v21 }
  0x40   : > { %490 = vlog2.f32 %v256_v23 }
  0x46   : > { %v491_v26 = vpop.eup %490 }
  0x47   : > { %v261_v28 = vmul.f32 0.6931472, %v491_v26 }
  0x49   : > { %v262_v29 = vsub.f32 %v258_v27, %v261_v28 }
  0x4b   : > { %v263_v32 = vmul.f32 1.442695, %v262_v29  ;;  %v267_v39 = vmul.f32 %v262_v29, %v259_v36 }
  0x4d   : > { %492 = vpow2.f32 %v263_v32 }
  0x53   : > { %v493_v35 = vpop.eup %492 }
  0x54   : > { %v265_v37 = vsub.f32 1.0, %v493_v35 }
  0x56   : > { %v266_v38 = vmul.f32 %v265_v37, %v265_v37 }
  0x58   : > { %v268_v40 = vsub.f32 0.0, %v266_v38 }
  0x5a   : > { %v269_v41 = vmul.f32 %v268_v40, %v267_v39 }
  0x5c   : > { %v271_v42 = vsel %vm270_vm4, %v269_v41, 0.0 }
  0x5d   : > { %v272_v43 = vrot.slane %v271_v42, 4 }
  0x5f   : > { %v273_v44 = vadd.f32 %v272_v43, %v271_v42 }
  0x61   : > { %v274_v45 = vrot.slane %v273_v44, 2 }
  0x63   : > { %v275_v46 = vadd.f32 %v274_v45, %v273_v44 }
  0x65   : > { %v276_v47 = vrot.slane %v275_v46, 1 }
  0x67   : > { %v277_v48 = vadd.f32 %v276_v47, %v275_v46 }
  0x69   : > { %278 = vst [vmem:[%s221_s18] sm:$0x1] %v277_v48 }
  0x6a   : > { %581 = shalt.err (!%p578_p13)
}
  0x6b   : > { %416 = dma.vmem_to_hbm [thread:$0]  (%p711_p9), %s292_s20, 16, %s294_s26, %s280_s19  }
  0x6c PF: > { %s305_s3 = sand.u32 1, %s620_s9   ;;  %p426_p0 = pnand %p397_p12, %p718_p11 }
  0x6d   : > { %s306_s7 = scalar_lea.sflag [#allocation4], %s305_s3 }
  0x6e   : > { %p427_p1 = pneg %p426_p0 }
  0x70   : > { %615 = dma.done.wait (%p427_p1), %s306_s7, 16  }
  0x71   : > { %617 = vsyncadd (%p427_p1), %s306_s7, 4294967280  ;;  %s21_s14 = sadd.s32 1, %s640_s14   ;;  %s809_s9 = smov %s624_s10 }
  0x72   : > { %p18_p2 = scmp.ge.s32.totalorder %s21_s14, 4   ;;  %s810_s10 = smov %s628_s11 }
  0x73   : > { %s811_s11 = smov %s716_s23  ;;  %s812_s12 = smov %s636_s13 }
  0x74   : > { %s813_s13 = smov %s815_s17  ;;  %20 = sbr.rel (!%p18_p2) target bundleno = 8 (0x8), region = 89 }
  0x79   :  { %311 = vsyncpa [#allocation3], 1 }
  0x7a   :  { %313 = vsyncpa [#allocation3 + $0x1], 1 }
  0x7b   :  { %314 = vsyncpa [#allocation6], 1 }
  0x7c   :  { %316 = vsyncpa [#allocation6 + $0x1], 1 }
  0x7d   :  { %317 = vsyncpa [#allocation4], 1 }
  0x7e   :  { %319 = vsyncpa [#allocation4 + $0x1], 1 }

</bundles_post_ra>
